<compile_context>
chip_gen: v7x
topology: tpu7x:2x2x1
jax: 0.10.0
libtpu: 0.0.40
codegen_flags: <defaults>
</compile_context>

<pallas_src>
import math
from functools import partial

import jax
import jax.numpy as jnp
from jax.experimental import pallas as pl
from jax.experimental.pallas import tpu as pltpu


def attention_kernel(x_ref, wqkv_ref, bqkv_ref, wo_ref, bo_ref, o_ref, *,
                     num_heads, head_dim):
    """One grid step: full MHA forward for a block of `bb` batch elements."""
    bb, S, D = x_ref.shape
    H, hd = num_heads, head_dim
    hidden = H * hd

    # ---- Fused Q/K/V projection: ONE 2D MXU matmul, M=bb*S, K=D, N=3*hidden.
    # Column layout of wqkv: [Wq*scale | Wk | Wv]; inside each block heads are
    # packed [h][hd] exactly as the PyTorch .view(B,S,H,hd) expects.
    x2 = x_ref[...].reshape(bb * S, D)
    qkv = jnp.dot(x2, wqkv_ref[...],
                  preferred_element_type=jnp.float32) + bqkv_ref[...]   # (bb*S, 3*hidden)

    # ---- Split heads into a leading batch dim (head-major: index = h*bb + b).
    # Static lane slices + leading-dim concat only; no broadcast_to, no extra
    # matmuls (the projection already ran in one MXU pass above).
    def split_heads(t2):                       # (bb*S, hidden) -> (H*bb, S, hd)
        return jnp.concatenate(
            [t2[:, h * hd:(h + 1) * hd].reshape(bb, S, hd) for h in range(H)],
            axis=0)

    q = split_heads(qkv[:, 0 * hidden:1 * hidden])   # 1/sqrt(hd) already folded in
    k = split_heads(qkv[:, 1 * hidden:2 * hidden])
    v = split_heads(qkv[:, 2 * hidden:3 * hidden])

    # ---- Scores + numerically stable softmax (no explicit K transpose).
    s = jnp.einsum("bqd,bkd->bqk", q, k,
                   preferred_element_type=jnp.float32)                  # (H*bb, S, S)
    s = s - jnp.max(s, axis=-1, keepdims=True)
    p = jnp.exp(s)
    denom = jnp.sum(p, axis=-1, keepdims=True)
    # EUP approx reciprocal (idle slot) + one Newton refinement: error ~1e-7.
    r = pl.reciprocal(denom, approx=True)
    r = r * (2.0 - denom * r)
    p = p * r
    # Dropout(p=0.1) on attention weights: inference-mode identity.

    att = jnp.einsum("bqk,bkd->bqd", p, v,
                     preferred_element_type=jnp.float32)                # (H*bb, S, hd)

    # ---- Merge heads back into lanes and do the output projection as ONE
    # 2D MXU matmul (bb*S, H*hd) @ (H*hd, hidden): head-sum rides the MXU K dim.
    att2 = jnp.concatenate(
        [att[h * bb:(h + 1) * bb] for h in range(H)], axis=-1)          # (bb, S, H*hd)
    att2 = att2.reshape(bb * S, H * hd)
    out = jnp.dot(att2, wo_ref[...],
                  preferred_element_type=jnp.float32) + bo_ref[...]     # (bb*S, hidden)

    # TODO(synk): for large S switch to a KV-tiled flash-style loop (online
    # softmax) and set vmem_limit_bytes — mandatory ~2x earlier in S on v7x
    # (64 MiB VMEM) than on v5e/v6e.
    # TODO(synk): hidden=32 < 128 lanes -> lane-masked stores; only make the
    # out_spec lane-dense (e.g. (bb, S*hidden)) if the writeback shows in a trace.
    o_ref[...] = out.reshape(bb, S, hidden).astype(o_ref.dtype)


def prep_params(params, num_heads):
    """ONE-TIME wrapper-side packing (hoisted out of the per-call path).

    Returns a dict of pre-packed arrays:
      wqkv (D, 3*hidden) = [Wq/sqrt(hd) | Wk | Wv]
      bqkv (1, 3*hidden) = [bq/sqrt(hd) | bk | bv]
      wo   (hidden, hidden), bo (1, hidden) unchanged.
    """
    D, hidden = params["wq"].shape
    hd = hidden // num_heads
    scale = 1.0 / math.sqrt(hd)
    wqkv = jnp.concatenate(
        [params["wq"] * scale, params["wk"], params["wv"]], axis=1)
    bqkv = jnp.concatenate(
        [params["bq"] * scale, params["bk"], params["bv"]], axis=1)
    return dict(wqkv=wqkv, bqkv=bqkv, wo=params["wo"], bo=params["bo"])


def attention_layer(x, prepped, *, num_heads, batch_block=None):
    """Forward pass. `prepped` must come from prep_params() (packed once)."""
    B, S, D = x.shape
    hidden = prepped["wo"].shape[1]
    hd = hidden // num_heads

    # Single grid step by default (grid is a serial loop on v5e/v6e).  On v7x,
    # pass batch_block=B//2 only when per-core compute exceeds ~0.35us/step.
    bb = B if batch_block is None else batch_block
    assert B % bb == 0
    grid = (B // bb,)

    kernel = partial(attention_kernel, num_heads=num_heads, head_dim=hd)

    return pl.pallas_call(
        kernel,
        out_shape=jax.ShapeDtypeStruct((B, S, hidden), x.dtype),
        grid_spec=pltpu.PrefetchScalarGridSpec(
            num_scalar_prefetch=0,
            grid=grid,
            in_specs=[
                pl.BlockSpec((bb, S, D), lambda g: (g, 0, 0)),        # x
                pl.BlockSpec((D, 3 * hidden), lambda g: (0, 0)),      # packed Wqkv
                pl.BlockSpec((1, 3 * hidden), lambda g: (0, 0)),      # packed bqkv
                pl.BlockSpec((hidden, hidden), lambda g: (0, 0)),     # Wo
                pl.BlockSpec((1, hidden), lambda g: (0, 0)),          # bo
            ],
            out_specs=pl.BlockSpec((bb, S, hidden), lambda g: (g, 0, 0)),
        ),
        compiler_params=pltpu.CompilerParams(
            dimension_semantics=("parallel",)),
    )(x, prepped["wqkv"], prepped["bqkv"], prepped["wo"], prepped["bo"])


def reference_attention(x, params, *, num_heads):
    """Plain-JAX reference mirroring the PyTorch forward (dropout = identity)."""
    B, S, D = x.shape
    hidden = params["wq"].shape[1]
    hd = hidden // num_heads

    def proj(w, b):
        return x @ w + b  # (B, S, hidden)

    q = proj(params["wq"], params["bq"]).reshape(B, S, num_heads, hd).transpose(0, 2, 1, 3)
    k = proj(params["wk"], params["bk"]).reshape(B, S, num_heads, hd).transpose(0, 2, 1, 3)
    v = proj(params["wv"], params["bv"]).reshape(B, S, num_heads, hd).transpose(0, 2, 1, 3)
    scores = jnp.einsum("bhqd,bhkd->bhqk", q, k) / jnp.sqrt(jnp.float32(hd))
    w = jax.nn.softmax(scores, axis=-1)
    att = jnp.einsum("bhqk,bhkd->bhqd", w, v).transpose(0, 2, 1, 3).reshape(B, S, hidden)
    return att @ params["wo"] + params["bo"]


if __name__ == "__main__":
    # Small shapes consistent with the module's forward.
    B, S, INPUT_DIM = 2, 8, 32
    HIDDEN_DIM, NUM_HEADS = 32, 4

    key = jax.random.PRNGKey(0)
    keys = jax.random.split(key, 10)
    x = jax.random.normal(keys[0], (B, S, INPUT_DIM), dtype=jnp.float32)

    def init_linear(kw, kb, fan_in, fan_out):
        bound = 1.0 / math.sqrt(fan_in)
        w = jax.random.uniform(kw, (fan_in, fan_out), jnp.float32, -bound, bound)
        b = jax.random.uniform(kb, (1, fan_out), jnp.float32, -bound, bound)
        return w, b

    wq, bq = init_linear(keys[1], keys[2], INPUT_DIM, HIDDEN_DIM)
    wk, bk = init_linear(keys[3], keys[4], INPUT_DIM, HIDDEN_DIM)
    wv, bv = init_linear(keys[5], keys[6], INPUT_DIM, HIDDEN_DIM)
    wo, bo = init_linear(keys[7], keys[8], HIDDEN_DIM, HIDDEN_DIM)
    params = dict(wq=wq, bq=bq, wk=wk, bk=bk, wv=wv, bv=bv, wo=wo, bo=bo)

    # Pack weights ONCE (hoisted out of the forward path).
    prepped = jax.tree.map(jax.block_until_ready, prep_params(params, NUM_HEADS))

    out = attention_layer(x, prepped, num_heads=NUM_HEADS)
    out = jax.block_until_ready(out)

    ref = reference_attention(x, params, num_heads=NUM_HEADS)
    assert out.shape == (B, S, HIDDEN_DIM)
    assert jnp.allclose(out, ref, atol=1e-4, rtol=1e-4), "mismatch vs reference"

    print("KERNEL_OK")
</pallas_src>

<mosaic_0001>
module attributes {stable_mosaic.version = 11 : i64} {
  func.func @attention_kernel(%arg0: i32, %arg1: memref<2x8x32xf32, #tpu.memory_space<vmem>>, %arg2: memref<32x96xf32, #tpu.memory_space<vmem>>, %arg3: memref<1x96xf32, #tpu.memory_space<vmem>>, %arg4: memref<32x32xf32, #tpu.memory_space<vmem>>, %arg5: memref<1x32xf32, #tpu.memory_space<vmem>>, %arg6: memref<2x8x32xf32, #tpu.memory_space<vmem>>) attributes {dimension_semantics = [#tpu.dimension_semantics<parallel>], iteration_bounds = array<i64: 1>, scalar_prefetch = 0 : i64, scratch_operands = 0 : i64, tpu.core_type = #tpu.core_type<tc>, window_params = [{transform_indices = @transform_0, window_bounds = array<i64: 2, 8, 32>}, {pipeline_mode = #tpu.pipeline_mode<synchronous>, transform_indices = @transform_1, window_bounds = array<i64: 32, 96>}, {pipeline_mode = #tpu.pipeline_mode<synchronous>, transform_indices = @transform_2, window_bounds = array<i64: 1, 96>}, {pipeline_mode = #tpu.pipeline_mode<synchronous>, transform_indices = @transform_3, window_bounds = array<i64: 32, 32>}, {pipeline_mode = #tpu.pipeline_mode<synchronous>, transform_indices = @transform_4, window_bounds = array<i64: 1, 32>}, {transform_indices = @transform_5, window_bounds = array<i64: 2, 8, 32>}]} {
    %c0 = arith.constant 0 : index
    %c0_0 = arith.constant 0 : index
    %c0_1 = arith.constant 0 : index
    %0 = vector.load %arg1[%c0, %c0_0, %c0_1] : memref<2x8x32xf32, #tpu.memory_space<vmem>>, vector<2x8x32xf32>
    %1 = vector.shape_cast %0 : vector<2x8x32xf32> to vector<16x32xf32>
    %c0_2 = arith.constant 0 : index
    %c0_3 = arith.constant 0 : index
    %2 = vector.load %arg2[%c0_2, %c0_3] : memref<32x96xf32, #tpu.memory_space<vmem>>, vector<32x96xf32>
    %cst = arith.constant dense<0.000000e+00> : vector<16x96xf32>
    %3 = tpu.matmul %1, %2, %cst {dimension_numbers = #tpu.dot_dimension_numbers<[1], [0], [0], [1], [0, 0, 1, 1], [], []>} : vector<16x32xf32>, vector<32x96xf32>, vector<16x96xf32> -> vector<16x96xf32>
    %c0_4 = arith.constant 0 : index
    %c0_5 = arith.constant 0 : index
    %4 = vector.load %arg3[%c0_4, %c0_5] : memref<1x96xf32, #tpu.memory_space<vmem>>, vector<1x96xf32>
    %5 = vector.broadcast %4 : vector<1x96xf32> to vector<16x96xf32>
    %6 = arith.addf %3, %5 : vector<16x96xf32>
    %7 = vector.extract_strided_slice %6 {offsets = [0, 0], sizes = [16, 32], strides = [1, 1]} : vector<16x96xf32> to vector<16x32xf32>
    %8 = vector.extract_strided_slice %7 {offsets = [0, 0], sizes = [16, 8], strides = [1, 1]} : vector<16x32xf32> to vector<16x8xf32>
    %9 = vector.shape_cast %8 : vector<16x8xf32> to vector<2x8x8xf32>
    %10 = vector.extract_strided_slice %7 {offsets = [0, 8], sizes = [16, 8], strides = [1, 1]} : vector<16x32xf32> to vector<16x8xf32>
    %11 = vector.shape_cast %10 : vector<16x8xf32> to vector<2x8x8xf32>
    %12 = vector.extract_strided_slice %7 {offsets = [0, 16], sizes = [16, 8], strides = [1, 1]} : vector<16x32xf32> to vector<16x8xf32>
    %13 = vector.shape_cast %12 : vector<16x8xf32> to vector<2x8x8xf32>
    %14 = vector.extract_strided_slice %7 {offsets = [0, 24], sizes = [16, 8], strides = [1, 1]} : vector<16x32xf32> to vector<16x8xf32>
    %15 = vector.shape_cast %14 : vector<16x8xf32> to vector<2x8x8xf32>
    %16 = tpu.concatenate %9, %11, %13, %15 in 0 : vector<2x8x8xf32>, vector<2x8x8xf32>, vector<2x8x8xf32>, vector<2x8x8xf32> -> vector<8x8x8xf32>
    %17 = vector.extract_strided_slice %6 {offsets = [0, 32], sizes = [16, 32], strides = [1, 1]} : vector<16x96xf32> to vector<16x32xf32>
    %18 = vector.extract_strided_slice %17 {offsets = [0, 0], sizes = [16, 8], strides = [1, 1]} : vector<16x32xf32> to vector<16x8xf32>
    %19 = vector.shape_cast %18 : vector<16x8xf32> to vector<2x8x8xf32>
    %20 = vector.extract_strided_slice %17 {offsets = [0, 8], sizes = [16, 8], strides = [1, 1]} : vector<16x32xf32> to vector<16x8xf32>
    %21 = vector.shape_cast %20 : vector<16x8xf32> to vector<2x8x8xf32>
    %22 = vector.extract_strided_slice %17 {offsets = [0, 16], sizes = [16, 8], strides = [1, 1]} : vector<16x32xf32> to vector<16x8xf32>
    %23 = vector.shape_cast %22 : vector<16x8xf32> to vector<2x8x8xf32>
    %24 = vector.extract_strided_slice %17 {offsets = [0, 24], sizes = [16, 8], strides = [1, 1]} : vector<16x32xf32> to vector<16x8xf32>
    %25 = vector.shape_cast %24 : vector<16x8xf32> to vector<2x8x8xf32>
    %26 = tpu.concatenate %19, %21, %23, %25 in 0 : vector<2x8x8xf32>, vector<2x8x8xf32>, vector<2x8x8xf32>, vector<2x8x8xf32> -> vector<8x8x8xf32>
    %27 = vector.extract_strided_slice %6 {offsets = [0, 64], sizes = [16, 32], strides = [1, 1]} : vector<16x96xf32> to vector<16x32xf32>
    %28 = vector.extract_strided_slice %27 {offsets = [0, 0], sizes = [16, 8], strides = [1, 1]} : vector<16x32xf32> to vector<16x8xf32>
    %29 = vector.shape_cast %28 : vector<16x8xf32> to vector<2x8x8xf32>
    %30 = vector.extract_strided_slice %27 {offsets = [0, 8], sizes = [16, 8], strides = [1, 1]} : vector<16x32xf32> to vector<16x8xf32>
    %31 = vector.shape_cast %30 : vector<16x8xf32> to vector<2x8x8xf32>
    %32 = vector.extract_strided_slice %27 {offsets = [0, 16], sizes = [16, 8], strides = [1, 1]} : vector<16x32xf32> to vector<16x8xf32>
    %33 = vector.shape_cast %32 : vector<16x8xf32> to vector<2x8x8xf32>
    %34 = vector.extract_strided_slice %27 {offsets = [0, 24], sizes = [16, 8], strides = [1, 1]} : vector<16x32xf32> to vector<16x8xf32>
    %35 = vector.shape_cast %34 : vector<16x8xf32> to vector<2x8x8xf32>
    %36 = tpu.concatenate %29, %31, %33, %35 in 0 : vector<2x8x8xf32>, vector<2x8x8xf32>, vector<2x8x8xf32>, vector<2x8x8xf32> -> vector<8x8x8xf32>
    "tpu.trace_start"() <{level = 10 : i32, message = "bqd,bkd->bqk"}> : () -> ()
    %cst_6 = arith.constant dense<0.000000e+00> : vector<8x8x8xf32>
    %37 = tpu.matmul %16, %26, %cst_6 {dimension_numbers = #tpu.dot_dimension_numbers<[2], [2], [1], [1], [0, 0, 0, 1, 1, 1], [0], [0]>} : vector<8x8x8xf32>, vector<8x8x8xf32>, vector<8x8x8xf32> -> vector<8x8x8xf32>
    "tpu.trace_stop"() : () -> ()
    %cst_7 = arith.constant dense<0xFF800000> : vector<8x8xf32>
    %38 = vector.multi_reduction <maximumf>, %37, %cst_7 [2] : vector<8x8x8xf32> to vector<8x8xf32>
    %39 = vector.shape_cast %38 : vector<8x8xf32> to vector<8x8x1xf32>
    %40 = vector.broadcast %39 : vector<8x8x1xf32> to vector<8x8x8xf32>
    %41 = arith.subf %37, %40 : vector<8x8x8xf32>
    %42 = math.exp %41 : vector<8x8x8xf32>
    %cst_8 = arith.constant dense<0.000000e+00> : vector<8x8xf32>
    %43 = vector.multi_reduction <add>, %42, %cst_8 [2] : vector<8x8x8xf32> to vector<8x8xf32>
    %44 = vector.shape_cast %43 : vector<8x8xf32> to vector<8x8x1xf32>
    %45 = tpu.reciprocal %44 {approx = true} : vector<8x8x1xf32> -> vector<8x8x1xf32>
    %46 = arith.mulf %44, %45 : vector<8x8x1xf32>
    %cst_9 = arith.constant 2.000000e+00 : f32
    %47 = vector.broadcast %cst_9 : f32 to vector<8x8x1xf32>
    %48 = arith.subf %47, %46 : vector<8x8x1xf32>
    %49 = arith.mulf %45, %48 : vector<8x8x1xf32>
    %50 = vector.broadcast %49 : vector<8x8x1xf32> to vector<8x8x8xf32>
    %51 = arith.mulf %42, %50 : vector<8x8x8xf32>
    "tpu.trace_start"() <{level = 10 : i32, message = "bqk,bkd->bqd"}> : () -> ()
    %cst_10 = arith.constant dense<0.000000e+00> : vector<8x8x8xf32>
    %52 = tpu.matmul %51, %36, %cst_10 {dimension_numbers = #tpu.dot_dimension_numbers<[2], [1], [1], [2], [0, 0, 0, 1, 1, 2], [0], [0]>} : vector<8x8x8xf32>, vector<8x8x8xf32>, vector<8x8x8xf32> -> vector<8x8x8xf32>
    "tpu.trace_stop"() : () -> ()
    %53 = vector.extract_strided_slice %52 {offsets = [0, 0, 0], sizes = [2, 8, 8], strides = [1, 1, 1]} : vector<8x8x8xf32> to vector<2x8x8xf32>
    %54 = vector.extract_strided_slice %52 {offsets = [2, 0, 0], sizes = [2, 8, 8], strides = [1, 1, 1]} : vector<8x8x8xf32> to vector<2x8x8xf32>
    %55 = vector.extract_strided_slice %52 {offsets = [4, 0, 0], sizes = [2, 8, 8], strides = [1, 1, 1]} : vector<8x8x8xf32> to vector<2x8x8xf32>
    %56 = vector.extract_strided_slice %52 {offsets = [6, 0, 0], sizes = [2, 8, 8], strides = [1, 1, 1]} : vector<8x8x8xf32> to vector<2x8x8xf32>
    %57 = tpu.concatenate %53, %54, %55, %56 in 2 : vector<2x8x8xf32>, vector<2x8x8xf32>, vector<2x8x8xf32>, vector<2x8x8xf32> -> vector<2x8x32xf32>
    %58 = vector.shape_cast %57 : vector<2x8x32xf32> to vector<16x32xf32>
    %c0_11 = arith.constant 0 : index
    %c0_12 = arith.constant 0 : index
    %59 = vector.load %arg4[%c0_11, %c0_12] : memref<32x32xf32, #tpu.memory_space<vmem>>, vector<32x32xf32>
    %cst_13 = arith.constant dense<0.000000e+00> : vector<16x32xf32>
    %60 = tpu.matmul %58, %59, %cst_13 {dimension_numbers = #tpu.dot_dimension_numbers<[1], [0], [0], [1], [0, 0, 1, 1], [], []>} : vector<16x32xf32>, vector<32x32xf32>, vector<16x32xf32> -> vector<16x32xf32>
    %c0_14 = arith.constant 0 : index
    %c0_15 = arith.constant 0 : index
    %61 = vector.load %arg5[%c0_14, %c0_15] : memref<1x32xf32, #tpu.memory_space<vmem>>, vector<1x32xf32>
    %62 = vector.broadcast %61 : vector<1x32xf32> to vector<16x32xf32>
    %63 = arith.addf %60, %62 : vector<16x32xf32>
    %64 = vector.shape_cast %63 : vector<16x32xf32> to vector<2x8x32xf32>
    %c0_16 = arith.constant 0 : index
    %c0_17 = arith.constant 0 : index
    %c0_18 = arith.constant 0 : index
    %65 = vector.load %arg6[%c0_16, %c0_17, %c0_18] : memref<2x8x32xf32, #tpu.memory_space<vmem>>, vector<2x8x32xf32>
    tpu.vector_store %arg6[%c0_16, %c0_17, %c0_18], %64 {strides = array<i32>} : memref<2x8x32xf32, #tpu.memory_space<vmem>>, vector<2x8x32xf32>,
    return
  }
  func.func @transform_0(%arg0: i32) -> (i32, i32, i32) {
    %c0_i32 = arith.constant 0 : i32
    %c0_i32_0 = arith.constant 0 : i32
    %c0_i32_1 = arith.constant 0 : i32
    return %arg0, %c0_i32, %c0_i32_0 : i32, i32, i32
  }
  func.func @transform_1(%arg0: i32) -> (i32, i32) {
    %c0_i32 = arith.constant 0 : i32
    %c0_i32_0 = arith.constant 0 : i32
    %c0_i32_1 = arith.constant 0 : i32
    return %c0_i32, %c0_i32_0 : i32, i32
  }
  func.func @transform_2(%arg0: i32) -> (i32, i32) {
    %c0_i32 = arith.constant 0 : i32
    %c0_i32_0 = arith.constant 0 : i32
    %c0_i32_1 = arith.constant 0 : i32
    return %c0_i32, %c0_i32_0 : i32, i32
  }
  func.func @transform_3(%arg0: i32) -> (i32, i32) {
    %c0_i32 = arith.constant 0 : i32
    %c0_i32_0 = arith.constant 0 : i32
    %c0_i32_1 = arith.constant 0 : i32
    return %c0_i32, %c0_i32_0 : i32, i32
  }
  func.func @transform_4(%arg0: i32) -> (i32, i32) {
    %c0_i32 = arith.constant 0 : i32
    %c0_i32_0 = arith.constant 0 : i32
    %c0_i32_1 = arith.constant 0 : i32
    return %c0_i32, %c0_i32_0 : i32, i32
  }
  func.func @transform_5(%arg0: i32) -> (i32, i32, i32) {
    %c0_i32 = arith.constant 0 : i32
    %c0_i32_0 = arith.constant 0 : i32
    %c0_i32_1 = arith.constant 0 : i32
    return %arg0, %c0_i32, %c0_i32_0 : i32, i32, i32
  }
}

</mosaic_0001>

<bundles_post_ra>
// kernel: tpu_custom_call.1
= control target key start
LH: loop header
LB: loop body
LE: loop exit
PB: predicated region body
PF: predicated region fallthrough
CT: control target
= control target key end

     0   :  { %10 = vsyncpa [#allocation3], 0  ;;  %s2282_s0 = inlined_call_operand.hbm [shape: f32[2,8,32], index: 0, kind: input, shape index: {}]   ;;  %s2283_s1 = inlined_call_operand.hbm [shape: f32[32,96], index: 1, kind: input, shape index: {}]   ;;  %s2284_s2 = inlined_call_operand.vmem [shape: f32[1,96], index: 2, kind: input, shape index: {}]   ;;  %s2285_s3 = inlined_call_operand.hbm [shape: f32[32,32], index: 3, kind: input, shape index: {}]   ;;  %s2286_s4 = inlined_call_operand.vmem [shape: f32[1,32], index: 4, kind: input, shape index: {}]   ;;  %s2287_s5 = inlined_call_operand.hbm [shape: f32[2,8,32], index: 5, kind: output, shape index: {}]  }
   0x1   :  { %11 = vsyncpa [#allocation6], 0 }
   0x2   :  { %12 = vsyncpa [#allocation4], 0  ;;  %s1977_s18 = smov [#allocation5]   ;;  %s1978_s20 = smov [#allocation2]  }
   0x3   :  { %s30_s19 = sshll.u32 %s1977_s18, 4  ;;  %s18_s21 = sshll.u32 %s1978_s20, 4  ;;  %s31_s19 = int_to_ptr.vmem [resolvable:$true] %s30_s19  ;;  %s2022_s21 = int_to_ptr.vmem [resolvable:$true] %s18_s21 }
   0x4   :  { %s1883_s24 = scalar_lea.hbm %s2283_s1, 512 }
   0x5   :  { %p1884_p0 = scmp.ne.s32.totalorder %s2283_s1, %s1883_s24  ;;  %p1887_p1 = scmp.lt.u32.totalorder %s1883_s24, %s2283_s1 }
   0x7   :  { %p1889_p2 = pnand %p1887_p1, %p1884_p0 }
   0x9   :  { %1892 = shalt.err (!%p1889_p2)
}
   0xa   :  { %s1893_s29 = scalar_lea.vmem %s31_s19, 512  ;;  %p1898_p4 = scmp.lt.s32.totalorder %s31_s19, %s31_s19 }
   0xb   :  { %p1894_p3 = scmp.ne.s32.totalorder %s31_s19, %s1893_s29  ;;  %p1899_p5 = scmp.lt.s32.totalorder %s1893_s29, %s1893_s29 }
   0xd   :  { %p1900_p6 = por %p1899_p5, %p1898_p4 }
   0xf   :  { %p1901_p7 = pnand %p1900_p6, %p1894_p3 }
  0x11   :  { %1904 = shalt.err (!%p1901_p7)
}
  0x12   :  { %s1979_s30 = smov 128   ;;  %s1980_s6 = smov 8  }
  0x13   :  { %36 = dma.hbm_to_vmem [thread:$0]  %s2283_s1, 512, %s31_s19, [#allocation6], %s1979_s30, %s1979_s30, %s1980_s6  }
  0x14   :  { %s1905_s11 = scalar_lea.hbm %s2282_s0, 256 }
  0x15   :  { %p1906_p8 = scmp.ne.s32.totalorder %s2282_s0, %s1905_s11  ;;  %p1909_p9 = scmp.lt.u32.totalorder %s1905_s11, %s2282_s0 }
  0x17   :  { %p1911_p10 = pnand %p1909_p9, %p1906_p8 }
  0x19   :  { %1914 = shalt.err (!%p1911_p10)
}
  0x1a   :  { %s1915_s16 = scalar_lea.vmem %s2022_s21, 256  ;;  %p1920_p12 = scmp.lt.s32.totalorder %s2022_s21, %s2022_s21 }
  0x1b   :  { %p1916_p11 = scmp.ne.s32.totalorder %s2022_s21, %s1915_s16  ;;  %p1921_p13 = scmp.lt.s32.totalorder %s1915_s16, %s1915_s16 }
  0x1d   :  { %p1922_p0 = por %p1921_p13, %p1920_p12 }
  0x1f   :  { %p1923_p1 = pnand %p1922_p0, %p1916_p11 }
  0x21   :  { %1926 = shalt.err (!%p1923_p1)
}
  0x22   :  { %24 = dma.hbm_to_vmem [thread:$0]  %s2282_s0, 256, %s2022_s21, [#allocation3], %s1979_s30, %s1979_s30, %s1980_s6  }
  0x23   :  { %s1981_s18 = smov [#allocation7]   ;;  %s1927_s23 = scalar_lea.hbm %s2285_s3, 512 }
  0x24   :  { %s44_s19 = sshll.u32 %s1981_s18, 4  ;;  %p1928_p2 = scmp.ne.s32.totalorder %s2285_s3, %s1927_s23  ;;  %s45_s19 = int_to_ptr.vmem [resolvable:$true] %s44_s19 }
  0x25   :  { %p1931_p3 = scmp.lt.u32.totalorder %s1927_s23, %s2285_s3 }
  0x27   :  { %p1933_p4 = pnand %p1931_p3, %p1928_p2 }
  0x29   :  { %1936 = shalt.err (!%p1933_p4)
}
  0x2a   :  { %s1937_s28 = scalar_lea.vmem %s45_s19, 512  ;;  %p1942_p6 = scmp.lt.s32.totalorder %s45_s19, %s45_s19 }
  0x2b   :  { %p1938_p5 = scmp.ne.s32.totalorder %s45_s19, %s1937_s28  ;;  %p1943_p7 = scmp.lt.s32.totalorder %s1937_s28, %s1937_s28 }
  0x2d   :  { %p1944_p8 = por %p1943_p7, %p1942_p6 }
  0x2f   :  { %p1945_p9 = pnand %p1944_p8, %p1938_p5 }
  0x31   :  { %1948 = shalt.err (!%p1945_p9)
}
  0x32   :  { %50 = dma.hbm_to_vmem [thread:$0]  %s2285_s3, 512, %s45_s19, [#allocation6], %s1979_s30, %s1979_s30, %s1980_s6  }
  0x33   :  { %1971 = dma.done.wait [#allocation3], 256  }
  0x34   :  { %1972 = vsyncadd [#allocation3], 4294967040 }
  0x35   :  { %1973 = dma.done.wait [#allocation6], 1024  }
  0x36   :  { %1974 = vsyncadd [#allocation6], 4294966272  ;;  %vm75_vm0 = vcmask 261120   ;;  %v64_v0 = vld [vmem:[#allocation5] sm:$0xff]  ;;  %v65_v1 = vld [vmem:[#allocation5 + $0x8] sm:$0xff]  ;;  %v1982_v10 = vmov 0.0  }
  0x37   :  { %v66_v2 = vld [vmem:[#allocation5 + $0x10] sm:$0xff]  ;;  %v1820_v3 = vpack.c.bf16 %v65_v1, %v64_v0  ;;  %v67_v4 = vld [vmem:[#allocation5 + $0x18] sm:$0xff]  ;;  %1729 = vmatprep.subr.mxu1 %v1982_v10  ;;  %s1983_s7 = smov 112   ;;  %s1984_s8 = smov 120   ;;  %vm1985_vm1 = vmmov 0   ;;  %vm173_vm2 = vcmask 64512  }
  0x38   :  { %v62_v5 = vld [vmem:[#allocation2] sm:$0xff]  ;;  %v1824_v6 = vpack.c.bf16 %v67_v4, %v66_v2  ;;  %v63_v7 = vld [vmem:[#allocation2 + $0x8] sm:$0xff]  ;;  %1731 = vmatprep.mubr.msk.f32.mxu1 %vm1985_vm1, %v1982_v10  ;;  %s1987_s9 = smov 96   ;;  %s1988_s10 = smov 64   ;;  %vm1526_vm3 = vcmask 130048   ;;  %vm1529_vm4 = vcmask 195584  }
  0x39   :  { %1726 = vmatprep.mubr.msk.f32.mxu0 %vm75_vm0, %v62_v5  ;;  %1821 = vmatprep.subr.bf16.mxu0 %v1820_v3  ;;  %v1644_v8 = vld [vmem:[%s2284_s2] ss:$0 sm:$0xff]  ;;  %s1986_s2 = smov 104   ;;  %s1989_s11 = smov 16  }
  0x3a   :  { %1823 = vmatpush3.bf16.msra.mxu0 %v1820_v3  ;;  %s1990_s12 = smov 24   ;;  %s1991_s15 = smov [#allocation8]  }
  0x3b   :  { %1825 = vmatprep.subr.bf16.mxu0 %v1824_v6  ;;  %s1631_s16 = sshll.u32 %s1991_s15, 4  ;;  %s1632_s16 = int_to_ptr.vmem [resolvable:$true] %s1631_s16 }
  0x3c   :  { %s1949_s1 = scalar_lea.vmem %s1632_s16, 256  ;;  %p1954_p11 = scmp.lt.s32.totalorder %s1632_s16, %s1632_s16 }
  0x3d   :  { %p1950_p10 = scmp.ne.s32.totalorder %s1632_s16, %s1949_s1  ;;  %p1955_p12 = scmp.lt.s32.totalorder %s1949_s1, %s1949_s1 }
  0x3e   :  { %1827 = vmatpush3.bf16.msra.mxu0 %v1824_v6 }
  0x3f   :  { %1749 = vmatprep.subr.mxu0 %v1982_v10  ;;  %p1956_p13 = por %p1955_p12, %p1954_p11 }
  0x41   :  { %1727 = vmatmul.mubr.msk.f32.vlgmr.msra.gmra.mrb[0].mxu0 %vm75_vm0, %v63_v7  ;;  %p1957_p0 = pnand %p1956_p13, %p1950_p10 }
  0x42   :  { %1751 = vmatprep.mubr.msk.f32.mxu0 %vm1985_vm1, %v1982_v10 }
 0x114   :  { %v1728_v9 = vpop.f32.mrb[0].mxu0 }
 0x115   :  { %v148_v11 = vpop.f32.mrb[1].mxu0  ;;  %v2089_v13 = vadd.f32 %v1728_v9, %v1644_v8 }
 0x116   :  { %v2081_v12 = vadd.f32 %v1644_v8, %v148_v11 }
 0x118   :  { %163 = vrot.lane.b32.xlu1 %v2081_v12, %s1983_s7  ;;  %159 = vrot.lane.b32.xlu0 %v2081_v12, %s1984_s8 }
 0x11c   :  { %165 = vrot.lane.b32.xlu1 %v2089_v13, %s1983_s7  ;;  %161 = vrot.lane.b32.xlu0 %v2089_v13, %s1984_s8 }
 0x120   :  { %169 = vrot.lane.b32.xlu1 %v2089_v13, %s1986_s2  ;;  %167 = vrot.lane.b32.xlu0 %v2081_v12, %s1986_s2 }
 0x124   :  { %248 = vrot.lane.b32.xlu1 %v2089_v13, %s1987_s9  ;;  %171 = vrot.lane.b32.xlu0 %v2081_v12, %s1987_s9 }
 0x18a   :  { %v2097_v14 = vpop.permute.xlu1 %163  ;;  %v2099_v15 = vpop.permute.xlu0 %159 }
 0x18b   :  { %324 = vrot.lane.b32.xlu0 %v2099_v15, %s1987_s9 }
 0x18e   :  { %v2102_v16 = vpop.permute.xlu1 %165  ;;  %v2104_v17 = vpop.permute.xlu0 %161 }
 0x18f   :  { %476 = vrot.lane.b32.xlu0 %v2097_v14, %s1987_s9  ;;  %400 = vrot.lane.b32.xlu1 %v2104_v17, %s1987_s9 }
 0x192   :  { %v2108_v18 = vpop.permute.xlu0 %167  ;;  %v2112_v19 = vpop.permute.xlu1 %169 }
 0x193   :  { %552 = vrot.lane.b32.xlu1 %v2102_v16, %s1987_s9  ;;  %628 = vrot.lane.b32.xlu0 %v2108_v18, %s1987_s9 }
 0x196   :  { %v172_v20 = vpop.permute.xlu0 %171  ;;  %v249_v21 = vpop.permute.xlu1 %248 }
 0x197   :  { %704 = vrot.lane.b32.xlu1 %v2112_v19, %s1987_s9  ;;  %1730 = vmatpush3.xpose.msk.msra.mxu1 %vm173_vm2, %v172_v20 }
 0x198   :  { %1734 = vmatprep.subr.mxu1 %v1982_v10 }
 0x19a   :  { %1732 = vmatmul.mubr.msk.f32.vlgmr.msra.gmra.mrb[0].mxu1 %vm173_vm2, %v2081_v12 }
 0x19b   :  { %1735 = vmatpush3.xpose.msk.msra.mxu1 %vm173_vm2, %v249_v21  ;;  %1736 = vmatprep.mubr.msk.f32.mxu1 %vm1985_vm1, %v1982_v10 }
 0x19c   :  { %1739 = vmatprep.subr.mxu1 %v1982_v10 }
 0x19e   :  { %1737 = vmatmul.mubr.msk.f32.vlgmr.msra.gmra.mrb[2].mxu1 %vm173_vm2, %v2089_v13 }
 0x19f   :  { %1741 = vmatprep.mubr.msk.f32.mxu1 %vm1985_vm1, %v1982_v10 }
 0x1fd   :  { %v325_v22 = vpop.permute.xlu0 %324 }
 0x1fe   :  { %1740 = vmatpush3.xpose.msk.msra.mxu1 %vm173_vm2, %v325_v22 }
 0x1ff   :  { %1744 = vmatprep.subr.mxu1 %v1982_v10 }
 0x201   :  { %v401_v23 = vpop.permute.xlu1 %400  ;;  %1742 = vmatmul.mubr.msk.f32.vlgmr.msra.gmra.mrb[4].mxu1 %vm173_vm2, %v2099_v15  ;;  %v477_v24 = vpop.permute.xlu0 %476 }
 0x202   :  { %1745 = vmatpush3.xpose.msk.msra.mxu1 %vm173_vm2, %v401_v23  ;;  %1750 = vmatpush3.xpose.msk.msra.mxu0 %vm173_vm2, %v477_v24 }
 0x203   :  { %1746 = vmatprep.mubr.msk.f32.mxu1 %vm1985_vm1, %v1982_v10  ;;  %1754 = vmatprep.subr.mxu1 %v1982_v10 }
 0x204   :  { %1759 = vmatprep.subr.mxu0 %v1982_v10 }
 0x205   :  { %v553_v25 = vpop.permute.xlu1 %552  ;;  %1747 = vmatmul.mubr.msk.f32.vlgmr.msra.gmra.mrb[6].mxu1 %vm173_vm2, %v2104_v17  ;;  %1752 = vmatmul.mubr.msk.f32.vlgmr.msra.gmra.mrb[2].mxu0 %vm173_vm2, %v2097_v14  ;;  %v629_v26 = vpop.permute.xlu0 %628 }
 0x206   :  { %1755 = vmatpush3.xpose.msk.msra.mxu1 %vm173_vm2, %v553_v25  ;;  %1760 = vmatpush3.xpose.msk.msra.mxu0 %vm173_vm2, %v629_v26 }
 0x207   :  { %1756 = vmatprep.mubr.msk.f32.mxu1 %vm1985_vm1, %v1982_v10  ;;  %1761 = vmatprep.mubr.msk.f32.mxu0 %vm1985_vm1, %v1982_v10 }
 0x208   :  { %1764 = vmatprep.subr.mxu1 %v1982_v10  ;;  %1769 = vmatprep.subr.mxu0 %v1982_v10 }
 0x209   :  { %v705_v27 = vpop.permute.xlu1 %704  ;;  %1757 = vmatmul.mubr.msk.f32.vlgmr.msra.gmra.mrb[8].mxu1 %vm173_vm2, %v2102_v16  ;;  %1762 = vmatmul.mubr.msk.f32.vlgmr.msra.gmra.mrb[4].mxu0 %vm173_vm2, %v2108_v18 }
 0x20a   :  { %1765 = vmatpush3.xpose.msk.msra.mxu1 %vm173_vm2, %v705_v27  ;;  %1766 = vmatprep.mubr.msk.f32.mxu1 %vm1985_vm1, %v1982_v10 }
 0x20b   :  { %1774 = vmatprep.subr.mxu1 %v1982_v10  ;;  %1771 = vmatprep.mubr.msk.f32.mxu0 %vm1985_vm1, %v1982_v10 }
 0x20d   :  { %1767 = vmatmul.mubr.msk.f32.vlgmr.msra.gmra.mrb[10].mxu1 %vm173_vm2, %v2112_v19 }
 0x20e   :  { %1776 = vmatprep.mubr.msk.f32.mxu1 %vm1985_vm1, %v1982_v10 }
 0x26d   :  { %v244_v28 = vpop.f32.mrb[0].mxu1 }
 0x26e   :  { %v1733_v29 = vpop.f32.mrb[1].mxu1  ;;  %v780_v30 = vsel %vm173_vm2, %v244_v28, -inf }
 0x26f   :  { %781 = vmax.xlane.f32.xlu0 %v780_v30 }
 0x271   :  { %v320_v31 = vpop.f32.mrb[2].mxu1 }
 0x272   :  { %v1738_v32 = vpop.f32.mrb[3].mxu1  ;;  %v783_v33 = vsel %vm173_vm2, %v320_v31, -inf }
 0x273   :  { %784 = vmax.xlane.f32.xlu1 %v783_v33 }
 0x2d4   :  { %v396_v34 = vpop.f32.mrb[4].mxu1 }
 0x2d5   :  { %v1743_v35 = vpop.f32.mrb[5].mxu1  ;;  %v786_v36 = vsel %vm173_vm2, %v396_v34, -inf }
 0x2d6   :  { %787 = vmax.xlane.f32.xlu0 %v786_v36 }
 0x2d8   :  { %v472_v37 = vpop.f32.mrb[6].mxu1  ;;  %v548_v38 = vpop.f32.mrb[2].mxu0 }
 0x2d9   :  { %v1748_v39 = vpop.f32.mrb[7].mxu1  ;;  %v1753_v40 = vpop.f32.mrb[3].mxu0  ;;  %v789_v41 = vsel %vm173_vm2, %v472_v37, -inf  ;;  %v792_v42 = vsel %vm173_vm2, %v548_v38, -inf }
 0x2da   :  { %790 = vmax.xlane.f32.xlu0 %v789_v41  ;;  %793 = vmax.xlane.f32.xlu1 %v792_v42 }
 0x2dc   :  { %v624_v43 = vpop.f32.mrb[8].mxu1  ;;  %v700_v44 = vpop.f32.mrb[4].mxu0 }
 0x2dd   :  { %v1758_v45 = vpop.f32.mrb[9].mxu1  ;;  %v1763_v46 = vpop.f32.mrb[5].mxu0  ;;  %v795_v47 = vsel %vm173_vm2, %v624_v43, -inf  ;;  %v798_v48 = vsel %vm173_vm2, %v700_v44, -inf }
 0x2de   :  { %796 = vmax.xlane.f32.xlu0 %v795_v47  ;;  %799 = vmax.xlane.f32.xlu1 %v798_v48 }
 0x2e0   :  { %v776_v49 = vpop.f32.mrb[10].mxu1 }
 0x2e1   :  { %v1768_v50 = vpop.f32.mrb[11].mxu1  ;;  %v801_v51 = vsel %vm173_vm2, %v776_v49, -inf }
 0x2e2   :  { %802 = vmax.xlane.f32.xlu0 %v801_v51 }
 0x2ef   :  { %892 = vrot.lane.b32.xlu1 %v2081_v12, %s1988_s10 }
 0x2f3   :  { %1044 = vrot.lane.b32.xlu1 %v2099_v15, %s1988_s10 }
 0x2f7   :  { %1120 = vrot.lane.b32.xlu1 %v2104_v17, %s1988_s10 }
 0x2f8   :  { %968 = vrot.lane.b32.xlu0 %v2089_v13, %s1988_s10 }
 0x2fb   :  { %1272 = vrot.lane.b32.xlu1 %v2102_v16, %s1988_s10 }
 0x2fc   :  { %1196 = vrot.lane.b32.xlu0 %v2097_v14, %s1988_s10  ;;  %v782_v54 = vpop.xlane.xlu0 %781 }
 0x2fd   :  { %v804_v55 = vsub.f32 %v244_v28, %v782_v54 }
 0x2ff   :  { %v812_v57 = vmul.f32 1.442695, %v804_v55 }
 0x300   :  { %v785_v52 = vpop.xlane.xlu1 %784 }
 0x301   :  { %v805_v53 = vsub.f32 %v320_v31, %v785_v52 }
 0x303   :  { %v814_v56 = vmul.f32 1.442695, %v805_v53 }
 0x305   :  { %1851 = vpow2.f32 %v814_v56 }
 0x306   :  { %1853 = vpow2.f32 %v812_v57 }
 0x30f   :  { %v2183_v58 = vpop.eup %1851 }
 0x310   :  { %v831_v59 = vsel %vm173_vm2, %v2183_v58, 0.0  ;;  %v2187_v60 = vpop.eup %1853 }
 0x311   :  { %v828_v61 = vsel %vm173_vm2, %v2187_v60, 0.0 }
 0x31b   :  { %832 = vadd.xlane.f32.xlu0 %v831_v59 }
 0x31f   :  { %829 = vadd.xlane.f32.xlu1 %v828_v61 }
 0x363   :  { %v788_v62 = vpop.xlane.xlu0 %787 }
 0x364   :  { %v806_v63 = vsub.f32 %v396_v34, %v788_v62 }
 0x366   :  { %v816_v0 = vmul.f32 1.442695, %v806_v63 }
 0x367   :  { %v794_v1 = vpop.xlane.xlu1 %793  ;;  %v791_v2 = vpop.xlane.xlu0 %790 }
 0x368   :  { %1855 = vpow2.f32 %v816_v0  ;;  %v808_v3 = vsub.f32 %v548_v38, %v794_v1  ;;  %v807_v4 = vsub.f32 %v472_v37, %v791_v2 }
 0x36a   :  { %v820_v5 = vmul.f32 1.442695, %v808_v3  ;;  %v818_v6 = vmul.f32 1.442695, %v807_v4 }
 0x36b   :  { %v800_v7 = vpop.xlane.xlu1 %799  ;;  %v797_v8 = vpop.xlane.xlu0 %796 }
 0x36c   :  { %1857 = vpow2.f32 %v820_v5  ;;  %v810_v9 = vsub.f32 %v700_v44, %v800_v7  ;;  %v809_v11 = vsub.f32 %v624_v43, %v797_v8 }
 0x36d   :  { %1859 = vpow2.f32 %v818_v6 }
 0x36e   :  { %v824_v12 = vmul.f32 1.442695, %v810_v9  ;;  %v822_v13 = vmul.f32 1.442695, %v809_v11 }
 0x36f   :  { %v893_v14 = vpop.permute.xlu1 %892  ;;  %v803_v15 = vpop.xlane.xlu0 %802 }
 0x370   :  { %1861 = vpow2.f32 %v824_v12  ;;  %v811_v16 = vsub.f32 %v776_v49, %v803_v15  ;;  %1770 = vmatpush3.msra.mxu0 %v893_v14 }
 0x371   :  { %1863 = vpow2.f32 %v822_v13  ;;  %1779 = vmatprep.subr.mxu0 %v1982_v10 }
 0x372   :  { %v2192_v17 = vpop.eup %1855  ;;  %v826_v20 = vmul.f32 1.442695, %v811_v16 }
 0x373   :  { %v969_v21 = vpop.permute.xlu0 %968  ;;  %v834_v22 = vsel %vm173_vm2, %v2192_v17, 0.0  ;;  %v1045_v33 = vpop.permute.xlu1 %1044 }
 0x374   :  { %1865 = vpow2.f32 %v826_v20  ;;  %835 = vadd.xlane.f32.xlu1 %v834_v22  ;;  %1775 = vmatpush3.msra.mxu1 %v969_v21 }
 0x375   :  { %1784 = vmatprep.subr.mxu1 %v1982_v10 }
 0x376   :  { %v2197_v23 = vpop.eup %1857 }
 0x377   :  { %v2199_v24 = vpop.eup %1859  ;;  %v840_v25 = vsel %vm173_vm2, %v2197_v23, 0.0  ;;  %v1121_v34 = vpop.permute.xlu1 %1120 }
 0x378   :  { %841 = vadd.xlane.f32.xlu1 %v840_v25  ;;  %v837_v26 = vsel %vm173_vm2, %v2199_v24, 0.0  ;;  %v1197_v35 = vpop.permute.xlu0 %1196 }
 0x379   :  { %838 = vadd.xlane.f32.xlu0 %v837_v26 }
 0x37a   :  { %v2205_v27 = vpop.eup %1861 }
 0x37b   :  { %v2207_v28 = vpop.eup %1863  ;;  %v846_v29 = vsel %vm173_vm2, %v2205_v27, 0.0  ;;  %v2221_v36 = vpop.permute.xlu1 %1272 }
 0x37c   :  { %847 = vadd.xlane.f32.xlu1 %v846_v29  ;;  %v843_v30 = vsel %vm173_vm2, %v2207_v28, 0.0  ;;  %v1533_v29 = vld [vmem:[#allocation7 + $0x8] sm:$0xff] }
 0x37d   :  { %844 = vadd.xlane.f32.xlu0 %v843_v30 }
 0x37e   :  { %v2213_v31 = vpop.eup %1865 }
 0x37f   :  { %v849_v32 = vsel %vm173_vm2, %v2213_v31, 0.0 }
 0x381   :  { %850 = vadd.xlane.f32.xlu0 %v849_v32  ;;  %v1534_v32 = vld [vmem:[#allocation7 + $0x10] sm:$0xff] }
 0x38d   :  { %1424 = vrot.lane.b32.xlu1 %v2112_v19, %s1988_s10 }
 0x397   :  { %1348 = vrot.lane.b32.xlu0 %v2108_v18, %s1988_s10 }
 0x3a8   :  { %v833_v37 = vpop.xlane.xlu0 %832 }
 0x3a9   :  { %1867 = vrcp.f32 %v833_v37 }
 0x3ac   :  { %v830_v38 = vpop.xlane.xlu1 %829 }
 0x3ad   :  { %1869 = vrcp.f32 %v830_v38 }
 0x3b3   :  { %v1868_v39 = vpop.eup %1867 }
 0x3b4   :  { %v861_v40 = vmul.f32 %v1868_v39, %v833_v37 }
 0x3b6   :  { %v869_v41 = vsub.f32 2.0, %v861_v40 }
 0x3b7   :  { %v1870_v42 = vpop.eup %1869 }
 0x3b8   :  { %v877_v43 = vmul.f32 %v1868_v39, %v869_v41  ;;  %v860_v44 = vmul.f32 %v1870_v42, %v830_v38 }
 0x3ba   :  { %v885_v19 = vmul.f32 %v2183_v58, %v877_v43  ;;  %v868_v45 = vsub.f32 2.0, %v860_v44 }
 0x3bc   :  { %v876_v46 = vmul.f32 %v1870_v42, %v868_v45  ;;  %1777 = vmatmul.mubr.msk.f32.vlgmr.msra.gmra.mrb[12].mxu1 %vm173_vm2, %v885_v19 }
 0x3bd   :  { %1785 = vmatpush3.msra.mxu1 %v1121_v34  ;;  %1786 = vmatprep.mubr.msk.f32.mxu1 %vm1985_vm1, %v1982_v10 }
 0x3be   :  { %v884_v18 = vmul.f32 %v2187_v60, %v876_v46  ;;  %1794 = vmatprep.subr.mxu1 %v1982_v10 }
 0x3c0   :  { %1772 = vmatmul.mubr.msk.f32.vlgmr.msra.gmra.mrb[6].mxu0 %vm173_vm2, %v884_v18 }
 0x3c1   :  { %1780 = vmatpush3.msra.mxu0 %v1045_v33  ;;  %1781 = vmatprep.mubr.msk.f32.mxu0 %vm1985_vm1, %v1982_v10  ;;  %v1535_v33 = vld [vmem:[#allocation7 + $0x18] sm:$0xff] }
 0x3c2   :  { %1789 = vmatprep.subr.mxu0 %v1982_v10  ;;  %v1832_v34 = vpack.c.bf16 %v1535_v33, %v1534_v32 }
 0x401   :  { %v836_v47 = vpop.xlane.xlu1 %835 }
 0x402   :  { %1871 = vrcp.f32 %v836_v47 }
 0x405   :  { %v842_v48 = vpop.xlane.xlu1 %841 }
 0x406   :  { %1873 = vrcp.f32 %v842_v48  ;;  %v839_v49 = vpop.xlane.xlu0 %838 }
 0x407   :  { %1875 = vrcp.f32 %v839_v49 }
 0x409   :  { %v848_v50 = vpop.xlane.xlu1 %847 }
 0x40a   :  { %1877 = vrcp.f32 %v848_v50  ;;  %v845_v51 = vpop.xlane.xlu0 %844 }
 0x40b   :  { %1879 = vrcp.f32 %v845_v51 }
 0x40c   :  { %v1872_v52 = vpop.eup %1871 }
 0x40d   :  { %v862_v53 = vmul.f32 %v1872_v52, %v836_v47  ;;  %v1425_v21 = vpop.permute.xlu1 %1424 }
 0x40e   :  { %v851_v54 = vpop.xlane.xlu0 %850 }
 0x40f   :  { %v870_v55 = vsub.f32 2.0, %v862_v53  ;;  %1881 = vrcp.f32 %v851_v54 }
 0x410   :  { %v1874_v56 = vpop.eup %1873 }
 0x411   :  { %v1876_v57 = vpop.eup %1875  ;;  %v878_v58 = vmul.f32 %v1872_v52, %v870_v55  ;;  %v864_v59 = vmul.f32 %v1874_v56, %v842_v48  ;;  %v1671_v55 = vld [vmem:[%s2286_s4] ss:$0 sm:$0xff] }
 0x412   :  { %v863_v60 = vmul.f32 %v1876_v57, %v839_v49  ;;  %v1349_v13 = vpop.permute.xlu0 %1348 }
 0x413   :  { %v886_v61 = vmul.f32 %v2192_v17, %v878_v58  ;;  %v872_v62 = vsub.f32 2.0, %v864_v59 }
 0x414   :  { %v1878_v63 = vpop.eup %1877  ;;  %v871_v0 = vsub.f32 2.0, %v863_v60 }
 0x415   :  { %v1880_v1 = vpop.eup %1879  ;;  %v880_v2 = vmul.f32 %v1874_v56, %v872_v62  ;;  %v866_v3 = vmul.f32 %v1878_v63, %v848_v50  ;;  %1782 = vmatmul.mubr.msk.f32.vlgmr.msra.gmra.mrb[8].mxu0 %vm173_vm2, %v886_v61 }
 0x416   :  { %v879_v4 = vmul.f32 %v1876_v57, %v871_v0  ;;  %v865_v5 = vmul.f32 %v1880_v1, %v845_v51  ;;  %1790 = vmatpush3.msra.mxu0 %v1197_v35  ;;  %1791 = vmatprep.mubr.msk.f32.mxu0 %vm1985_vm1, %v1982_v10 }
 0x417   :  { %v888_v6 = vmul.f32 %v2197_v23, %v880_v2  ;;  %v874_v7 = vsub.f32 2.0, %v866_v3  ;;  %1799 = vmatprep.subr.mxu0 %v1982_v10 }
 0x418   :  { %v887_v8 = vmul.f32 %v2199_v24, %v879_v4  ;;  %v873_v9 = vsub.f32 2.0, %v865_v5 }
 0x419   :  { %v1882_v11 = vpop.eup %1881  ;;  %v882_v12 = vmul.f32 %v1878_v63, %v874_v7  ;;  %1792 = vmatmul.mubr.msk.f32.vlgmr.msra.gmra.mrb[10].mxu0 %vm173_vm2, %v888_v6 }
 0x41a   :  { %v881_v14 = vmul.f32 %v1880_v1, %v873_v9  ;;  %v867_v15 = vmul.f32 %v1882_v11, %v851_v54  ;;  %1787 = vmatmul.mubr.msk.f32.vlgmr.msra.gmra.mrb[14].mxu1 %vm173_vm2, %v887_v8  ;;  %1800 = vmatpush3.msra.mxu0 %v1349_v13 }
 0x41b   :  { %v890_v16 = vmul.f32 %v2205_v27, %v882_v12  ;;  %1795 = vmatpush3.msra.mxu1 %v2221_v36  ;;  %1796 = vmatprep.mubr.msk.f32.mxu1 %vm1985_vm1, %v1982_v10 }
 0x41c   :  { %v889_v17 = vmul.f32 %v2207_v28, %v881_v14  ;;  %v875_v20 = vsub.f32 2.0, %v867_v15  ;;  %1801 = vmatprep.mubr.msk.f32.mxu0 %vm1985_vm1, %v1982_v10  ;;  %1804 = vmatprep.subr.mxu1 %v1982_v10  ;;  %v1532_v28 = vld [vmem:[#allocation7] sm:$0xff] }
 0x41d   :  { %1802 = vmatmul.mubr.msk.f32.vlgmr.msra.gmra.mrb[12].mxu0 %vm173_vm2, %v890_v16  ;;  %v1828_v30 = vpack.c.bf16 %v1533_v29, %v1532_v28 }
 0x41e   :  { %v883_v22 = vmul.f32 %v1882_v11, %v875_v20  ;;  %1797 = vmatmul.mubr.msk.f32.vlgmr.msra.gmra.mrb[16].mxu1 %vm173_vm2, %v889_v17 }
 0x41f   :  { %1805 = vmatpush3.msra.mxu1 %v1425_v21  ;;  %1806 = vmatprep.mubr.msk.f32.mxu1 %vm1985_vm1, %v1982_v10 }
 0x420   :  { %v891_v23 = vmul.f32 %v2213_v31, %v883_v22  ;;  %1829 = vmatprep.subr.bf16.mxu0 %v1828_v30 }
 0x421   :  { %1831 = vmatpush3.bf16.msra.mxu0 %v1828_v30 }
 0x422   :  { %1807 = vmatmul.mubr.msk.f32.vlgmr.msra.gmra.mrb[18].mxu1 %vm173_vm2, %v891_v23  ;;  %1833 = vmatprep.subr.bf16.mxu0 %v1832_v34 }
 0x425   :  { %1835 = vmatpush3.bf16.msra.mxu0 %v1832_v34 }
 0x48f   :  { %v1040_v24 = vpop.f32.mrb[12].mxu1 }
 0x490   :  { %v1778_v25 = vpop.f32.mrb[13].mxu1 }
 0x493   :  { %v964_v26 = vpop.f32.mrb[6].mxu0 }
 0x494   :  { %v1773_v27 = vpop.f32.mrb[7].mxu0 }
 0x4e8   :  { %v1116_v35 = vpop.f32.mrb[8].mxu0 }
 0x4e9   :  { %v1783_v10 = vpop.f32.mrb[9].mxu0  ;;  %1502 = vrot.lane.b32.xlu0 %v1116_v35, %s1980_s6 }
 0x4ec   :  { %v1268_v31 = vpop.f32.mrb[10].mxu0 }
 0x4ed   :  { %v1192_v36 = vpop.f32.mrb[14].mxu1  ;;  %1510 = vrot.lane.b32.xlu0 %v1268_v31, %s1989_s11  ;;  %v1793_v37 = vpop.f32.mrb[11].mxu0 }
 0x4ee   :  { %1504 = vrot.lane.b32.xlu1 %v1192_v36, %s1980_s6  ;;  %v1788_v38 = vpop.f32.mrb[15].mxu1 }
 0x4f0   :  { %v1420_v39 = vpop.f32.mrb[12].mxu0 }
 0x4f1   :  { %v1344_v40 = vpop.f32.mrb[16].mxu1  ;;  %1518 = vrot.lane.b32.xlu0 %v1420_v39, %s1990_s12  ;;  %v1803_v41 = vpop.f32.mrb[13].mxu0 }
 0x4f2   :  { %1512 = vrot.lane.b32.xlu1 %v1344_v40, %s1989_s11  ;;  %v1798_v42 = vpop.f32.mrb[17].mxu1 }
 0x4f5   :  { %v1496_v43 = vpop.f32.mrb[18].mxu1 }
 0x4f6   :  { %1520 = vrot.lane.b32.xlu1 %v1496_v43, %s1990_s12  ;;  %v1808_v44 = vpop.f32.mrb[19].mxu1 }
 0x55b   :  { %v1503_v19 = vpop.permute.xlu0 %1502 }
 0x55c   :  { %v1524_v18 = vsel %vm173_vm2, %v964_v26, %v1503_v19 }
 0x55f   :  { %v1511_v45 = vpop.permute.xlu0 %1510 }
 0x560   :  { %v1505_v46 = vpop.permute.xlu1 %1504  ;;  %v1527_v47 = vsel %vm1526_vm3, %v1524_v18, %v1511_v45 }
 0x561   :  { %v1525_v51 = vsel %vm173_vm2, %v1040_v24, %v1505_v46 }
 0x563   :  { %v1519_v48 = vpop.permute.xlu0 %1518 }
 0x564   :  { %v1513_v49 = vpop.permute.xlu1 %1512  ;;  %v1530_v50 = vsel %vm1529_vm4, %v1527_v47, %v1519_v48 }
 0x565   :  { %1817 = vmatprep.mubr.msk.f32.mxu0 %vm75_vm0, %v1530_v50  ;;  %v1528_v52 = vsel %vm1526_vm3, %v1525_v51, %v1513_v49 }
 0x568   :  { %v1521_v53 = vpop.permute.xlu1 %1520 }
 0x569   :  { %v1531_v54 = vsel %vm1529_vm4, %v1528_v52, %v1521_v53 }
 0x56a   :  { %1818 = vmatmul.mubr.msk.f32.vlgmr.msra.gmra.mrb[14].mxu0 %vm75_vm0, %v1531_v54 }
 0x63d   :  { %v1819_v56 = vpop.f32.mrb[14].mxu0 }
 0x63e   :  { %v1621_v57 = vadd.f32 %v1819_v56, %v1671_v55  ;;  %v1615_v58 = vpop.f32.mrb[15].mxu0 }
 0x63f   :  { %v1616_v59 = vadd.f32 %v1671_v55, %v1615_v58 }
 0x640   :  { %1625 = vst.msk [vmem:[#allocation8 + $0x8] sm:$0xff] %vm75_vm0, %v1621_v57 }
 0x641   :  { %1624 = vst.msk [vmem:[#allocation8] sm:$0xff] %vm75_vm0, %v1616_v59 }
 0x642   :  { %1960 = shalt.err (!%p1957_p0)
}
 0x643   :  { %s1961_s18 = scalar_lea.hbm %s2287_s5, 256 }
 0x644   :  { %p1962_p1 = scmp.ne.s32.totalorder %s2287_s5, %s1961_s18  ;;  %p1965_p2 = scmp.lt.u32.totalorder %s1961_s18, %s2287_s5 }
 0x646   :  { %p1967_p3 = pnand %p1965_p2, %p1962_p1 }
 0x648   :  { %1970 = shalt.err (!%p1967_p3)
}
 0x649   :  { %1637 = dma.vmem_to_hbm [thread:$0]  %s1632_s16, 256, %s2287_s5, [#allocation4], %s1979_s30, %s1979_s30, %s1980_s6  }
 0x64a   :  { %1975 = dma.done.wait [#allocation4], 256  }
 0x64b   :  { %1976 = vsyncadd [#allocation4], 4294967040 }
 0x64c   :  { %1641 = vsyncpa [#allocation3], 1 }
 0x64d   :  { %1642 = vsyncpa [#allocation6], 1 }
 0x64e   :  { %1643 = vsyncpa [#allocation4], 1 }

</bundles_post_ra>
